<compile_context>
chip_gen: v6e
topology: v6e:2x2x1
jax: 0.10.0
libtpu: 0.0.40
codegen_flags: <defaults>
</compile_context>

<pallas_src>
import functools

import jax
import jax.numpy as jnp
from jax.experimental import pallas as pl
from jax.experimental.pallas import tpu as pltpu


def _make_divisible(ch, divisor=8, min_ch=None):
    if min_ch is None:
        min_ch = divisor
    new_ch = max(min_ch, int(ch + divisor / 2) // divisor * divisor)
    if new_ch < 0.9 * ch:
        new_ch += divisor
    return new_ch


def _senet_kernel(x_ref, w1t_ref, b1_ref, w2t_ref, b2_ref, o_ref, *, inv_hw):
    # x_ref block: (Nb, C, HW); weights/biases are full arrays, grid-invariant (resident).

    # ---- squeeze: AdaptiveAvgPool2d((1,1)) over the lane (HW) axis, f32 accumulation ----
    pooled = jnp.sum(x_ref[...].astype(jnp.float32), axis=2) * inv_hw           # (Nb, C)

    # ---- excitation: two tiny FCs, batched over Nb (one MXU dot each, off the roofline) ----
    h = jnp.dot(pooled, w1t_ref[...].astype(jnp.float32),                        # (Nb, SE_C)
                preferred_element_type=jnp.float32,
                precision=jax.lax.Precision.HIGHEST)
    h = jnp.clip(h + b1_ref[...].astype(jnp.float32), 0.0, 6.0)                  # ReLU6

    s = jnp.dot(h, w2t_ref[...].astype(jnp.float32),                             # (Nb, C)
                preferred_element_type=jnp.float32,
                precision=jax.lax.Precision.HIGHEST)
    s = s + b2_ref[...].astype(jnp.float32)
    s = jnp.clip(s + 3.0, 0.0, 6.0) * (1.0 / 6.0)                                # hardsigmoid

    # ---- channel-wise scale of the streamed tile ----
    out_dtype = jnp.dtype(o_ref.dtype)
    if out_dtype in (jnp.dtype(jnp.bfloat16), jnp.dtype(jnp.float16)):
        # Low-precision activations: multiply in the activation dtype (halves vreg/VALU
        # traffic on v6e/v7x).  Pooling above stays in f32 for accuracy.
        # TODO(synk): on v5e (no bf16 VALU) an f32 multiply path would be preferable.
        o_ref[...] = x_ref[...] * s.astype(out_dtype)[:, :, None]
    else:
        o_ref[...] = (x_ref[...].astype(jnp.float32) * s[:, :, None]).astype(o_ref.dtype)


def senet_forward(x_nchw, w1, b1, w2, b2):
    """x_nchw: (N, C, H, W). w1: (SE_C, C), b1: (SE_C,), w2: (C, SE_C), b2: (C,)."""
    n, c, h, w = x_nchw.shape
    hw = h * w
    se_c = w1.shape[0]
    itemsize = jnp.dtype(x_nchw.dtype).itemsize

    # No spatial padding / post-slice: the block's last dim equals the full HW extent
    # (legal even when HW is not a multiple of 128); masked stores are far cheaper than
    # an extra HBM round trip on a mem-bound kernel.
    x_flat = x_nchw.reshape(n, c, hw)

    w1t = jnp.transpose(w1)            # (C, SE_C)  -> fc1 is pooled @ W1^T
    w2t = jnp.transpose(w2)            # (SE_C, C)  -> fc2 is h @ W2^T
    b1r = b1.reshape(1, se_c)
    b2r = b2.reshape(1, c)

    # ---- generation-aware VMEM budgeting ----
    try:
        vmem_cap = int(pltpu.get_tpu_info().vmem_capacity_bytes)
    except Exception:  # pragma: no cover - conservative fallback (v7x per-TC VMEM)
        vmem_cap = 64 << 20
    tile_budget = int(0.45 * vmem_cap)           # budget for double-buffered in+out tiles

    per_batch_bytes = c * hw * itemsize
    if 4 * per_batch_bytes > tile_budget:
        # Even a single-batch tile cannot be double-buffered within budget.
        # TODO(synk): replace with a two-pass HW-chunked pipeline to keep overlap on v7x.
        nb = 1
        pipeline_mode = pl.Buffered(1)
        live_tile_bytes = 2 * per_batch_bytes
    else:
        nb = max(1, min(n, tile_budget // (4 * per_batch_bytes)))
        if n >= 2:
            nb = min(nb, pl.cdiv(n, 2))          # keep >= 2 parallel grid steps (v7x: 2 TCs)
        pipeline_mode = None
        live_tile_bytes = 4 * nb * per_batch_bytes

    grid = (pl.cdiv(n, nb),)

    spec_kwargs = {} if pipeline_mode is None else {"pipeline_mode": pipeline_mode}
    x_spec = pl.BlockSpec((nb, c, hw), lambda i: (i, 0, 0), **spec_kwargs)
    o_spec = pl.BlockSpec((nb, c, hw), lambda i: (i, 0, 0), **spec_kwargs)

    weight_bytes = (2 * c * se_c + se_c + c) * 4
    vmem_need = live_tile_bytes + 4 * weight_bytes + (8 << 20)
    vmem_limit = int(min(max(vmem_need, 16 << 20), int(0.9 * vmem_cap)))

    cost = pl.CostEstimate(
        flops=int(4 * n * c * se_c + 2 * n * c * hw),
        transcendentals=0,
        bytes_accessed=int(2 * n * c * hw * itemsize + weight_bytes),
    )

    kernel = functools.partial(_senet_kernel, inv_hw=1.0 / float(hw))

    out_flat = pl.pallas_call(
        kernel,
        out_shape=jax.ShapeDtypeStruct((n, c, hw), x_nchw.dtype),
        grid_spec=pltpu.PrefetchScalarGridSpec(
            num_scalar_prefetch=0,
            grid=grid,
            in_specs=[
                x_spec,                                        # x (per-step batch tile)
                pl.BlockSpec((c, se_c), lambda i: (0, 0)),     # W1^T
                pl.BlockSpec((1, se_c), lambda i: (0, 0)),     # b1
                pl.BlockSpec((se_c, c), lambda i: (0, 0)),     # W2^T
                pl.BlockSpec((1, c), lambda i: (0, 0)),        # b2
            ],
            out_specs=o_spec,
        ),
        compiler_params=pltpu.CompilerParams(
            dimension_semantics=("parallel",),
            vmem_limit_bytes=vmem_limit,
        ),
        cost_estimate=cost,
    )(x_flat, w1t, b1r, w2t, b2r)

    return out_flat.reshape(n, c, h, w)


def _reference(x, w1, b1, w2, b2):
    pooled = jnp.mean(x, axis=(2, 3), keepdims=True)                       # (N,C,1,1)
    h = jnp.einsum('oc,ncij->noij', w1, pooled) + b1[None, :, None, None]  # (N,SE_C,1,1)
    h = jnp.clip(h, 0.0, 6.0)
    s = jnp.einsum('oc,ncij->noij', w2, h) + b2[None, :, None, None]       # (N,C,1,1)
    s = jnp.clip(s + 3.0, 0.0, 6.0) / 6.0
    return x * s


if __name__ == "__main__":
    key = jax.random.PRNGKey(0)
    kx, k1, k2, k3, k4, kx2 = jax.random.split(key, 6)

    N, C, H, W = 2, 16, 16, 16
    SE_C = _make_divisible(C // 4, 8)   # = 8

    x = jax.random.normal(kx, (N, C, H, W), dtype=jnp.float32)
    # 1x1 conv weights: (out_c, in_c, 1, 1) stored as (out_c, in_c)
    w1 = jax.random.normal(k1, (SE_C, C), dtype=jnp.float32) * 0.1
    b1 = jax.random.normal(k2, (SE_C,), dtype=jnp.float32) * 0.1
    w2 = jax.random.normal(k3, (C, SE_C), dtype=jnp.float32) * 0.1
    b2 = jax.random.normal(k4, (C,), dtype=jnp.float32) * 0.1

    out = jax.block_until_ready(senet_forward(x, w1, b1, w2, b2))
    ref = _reference(x, w1, b1, w2, b2)
    assert out.shape == (N, C, H, W)
    assert jnp.allclose(out, ref, atol=1e-4, rtol=1e-4), "mismatch vs reference (16x16)"

    # MobileNetV3's typical 7x7 SE stage: HW=49 is not a multiple of 128 but equals the
    # full array extent — exercised without any wrapper-side padding or post-slice.
    x2 = jax.random.normal(kx2, (N, C, 7, 7), dtype=jnp.float32)
    out2 = jax.block_until_ready(senet_forward(x2, w1, b1, w2, b2))
    ref2 = _reference(x2, w1, b1, w2, b2)
    assert out2.shape == (N, C, 7, 7)
    assert jnp.allclose(out2, ref2, atol=1e-4, rtol=1e-4), "mismatch vs reference (7x7)"

    print("KERNEL_OK")
</pallas_src>

<mosaic_0001>
module attributes {stable_mosaic.version = 11 : i64} {
  func.func @_senet_kernel(%arg0: i32, %arg1: memref<1x16x256xf32, #tpu.memory_space<vmem>>, %arg2: memref<16x8xf32, #tpu.memory_space<vmem>>, %arg3: memref<1x8xf32, #tpu.memory_space<vmem>>, %arg4: memref<8x16xf32, #tpu.memory_space<vmem>>, %arg5: memref<1x16xf32, #tpu.memory_space<vmem>>, %arg6: memref<1x16x256xf32, #tpu.memory_space<vmem>>) attributes {dimension_semantics = [#tpu.dimension_semantics<parallel>], iteration_bounds = array<i64: 2>, scalar_prefetch = 0 : i64, scratch_operands = 0 : i64, tpu.core_type = #tpu.core_type<tc>, window_params = [{transform_indices = @transform_0, window_bounds = array<i64: 1, 16, 256>}, {pipeline_mode = #tpu.pipeline_mode<synchronous>, transform_indices = @transform_1, window_bounds = array<i64: 16, 8>}, {pipeline_mode = #tpu.pipeline_mode<synchronous>, transform_indices = @transform_2, window_bounds = array<i64: 1, 8>}, {pipeline_mode = #tpu.pipeline_mode<synchronous>, transform_indices = @transform_3, window_bounds = array<i64: 8, 16>}, {pipeline_mode = #tpu.pipeline_mode<synchronous>, transform_indices = @transform_4, window_bounds = array<i64: 1, 16>}, {transform_indices = @transform_5, window_bounds = array<i64: 1, 16, 256>}]} {
    %c0 = arith.constant 0 : index
    %c0_0 = arith.constant 0 : index
    %c0_1 = arith.constant 0 : index
    %0 = vector.load %arg1[%c0, %c0_0, %c0_1] : memref<1x16x256xf32, #tpu.memory_space<vmem>>, vector<1x16x256xf32>
    %cst = arith.constant dense<0.000000e+00> : vector<1x16xf32>
    %1 = vector.multi_reduction <add>, %0, %cst [2] : vector<1x16x256xf32> to vector<1x16xf32>
    %cst_2 = arith.constant 3.906250e-03 : f32
    %2 = vector.broadcast %cst_2 : f32 to vector<1x16xf32>
    %3 = arith.mulf %1, %2 : vector<1x16xf32>
    %c0_3 = arith.constant 0 : index
    %c0_4 = arith.constant 0 : index
    %4 = vector.load %arg2[%c0_3, %c0_4] : memref<16x8xf32, #tpu.memory_space<vmem>>, vector<16x8xf32>
    %cst_5 = arith.constant dense<0.000000e+00> : vector<1x8xf32>
    %5 = tpu.matmul %3, %4, %cst_5 {dimension_numbers = #tpu.dot_dimension_numbers<[1], [0], [0], [1], [0, 0, 1, 1], [], []>, precision = #tpu.contract_precision<fp32>} : vector<1x16xf32>, vector<16x8xf32>, vector<1x8xf32> -> vector<1x8xf32>
    %c0_6 = arith.constant 0 : index
    %c0_7 = arith.constant 0 : index
    %6 = vector.load %arg3[%c0_6, %c0_7] : memref<1x8xf32, #tpu.memory_space<vmem>>, vector<1x8xf32>
    %7 = arith.addf %5, %6 : vector<1x8xf32>
    %cst_8 = arith.constant 0.000000e+00 : f32
    %cst_9 = arith.constant 6.000000e+00 : f32
    %8 = vector.broadcast %cst_8 : f32 to vector<1x8xf32>
    %9 = arith.maximumf %8, %7 : vector<1x8xf32>
    %10 = vector.broadcast %cst_9 : f32 to vector<1x8xf32>
    %11 = arith.minimumf %10, %9 : vector<1x8xf32>
    %c0_10 = arith.constant 0 : index
    %c0_11 = arith.constant 0 : index
    %12 = vector.load %arg4[%c0_10, %c0_11] : memref<8x16xf32, #tpu.memory_space<vmem>>, vector<8x16xf32>
    %cst_12 = arith.constant dense<0.000000e+00> : vector<1x16xf32>
    %13 = tpu.matmul %11, %12, %cst_12 {dimension_numbers = #tpu.dot_dimension_numbers<[1], [0], [0], [1], [0, 0, 1, 1], [], []>, precision = #tpu.contract_precision<fp32>} : vector<1x8xf32>, vector<8x16xf32>, vector<1x16xf32> -> vector<1x16xf32>
    %c0_13 = arith.constant 0 : index
    %c0_14 = arith.constant 0 : index
    %14 = vector.load %arg5[%c0_13, %c0_14] : memref<1x16xf32, #tpu.memory_space<vmem>>, vector<1x16xf32>
    %15 = arith.addf %13, %14 : vector<1x16xf32>
    %cst_15 = arith.constant 3.000000e+00 : f32
    %16 = vector.broadcast %cst_15 : f32 to vector<1x16xf32>
    %17 = arith.addf %15, %16 : vector<1x16xf32>
    %cst_16 = arith.constant 0.000000e+00 : f32
    %cst_17 = arith.constant 6.000000e+00 : f32
    %18 = vector.broadcast %cst_16 : f32 to vector<1x16xf32>
    %19 = arith.maximumf %18, %17 : vector<1x16xf32>
    %20 = vector.broadcast %cst_17 : f32 to vector<1x16xf32>
    %21 = arith.minimumf %20, %19 : vector<1x16xf32>
    %cst_18 = arith.constant 0.166666672 : f32
    %22 = vector.broadcast %cst_18 : f32 to vector<1x16xf32>
    %23 = arith.mulf %21, %22 : vector<1x16xf32>
    %c0_19 = arith.constant 0 : index
    %c0_20 = arith.constant 0 : index
    %c0_21 = arith.constant 0 : index
    %24 = vector.load %arg1[%c0_19, %c0_20, %c0_21] : memref<1x16x256xf32, #tpu.memory_space<vmem>>, vector<1x16x256xf32>
    %25 = vector.shape_cast %23 : vector<1x16xf32> to vector<1x16x1xf32>
    %26 = vector.broadcast %25 : vector<1x16x1xf32> to vector<1x16x256xf32>
    %27 = arith.mulf %24, %26 : vector<1x16x256xf32>
    %c0_22 = arith.constant 0 : index
    %c0_23 = arith.constant 0 : index
    %c0_24 = arith.constant 0 : index
    %28 = vector.load %arg6[%c0_22, %c0_23, %c0_24] : memref<1x16x256xf32, #tpu.memory_space<vmem>>, vector<1x16x256xf32>
    tpu.vector_store %arg6[%c0_22, %c0_23, %c0_24], %27 {strides = array<i32>} : memref<1x16x256xf32, #tpu.memory_space<vmem>>, vector<1x16x256xf32>,
    return
  }
  func.func @transform_0(%arg0: i32) -> (i32, i32, i32) {
    %c0_i32 = arith.constant 0 : i32
    %c0_i32_0 = arith.constant 0 : i32
    %c0_i32_1 = arith.constant 0 : i32
    return %arg0, %c0_i32, %c0_i32_0 : i32, i32, i32
  }
  func.func @transform_1(%arg0: i32) -> (i32, i32) {
    %c0_i32 = arith.constant 0 : i32
    %c0_i32_0 = arith.constant 0 : i32
    %c0_i32_1 = arith.constant 0 : i32
    return %c0_i32, %c0_i32_0 : i32, i32
  }
  func.func @transform_2(%arg0: i32) -> (i32, i32) {
    %c0_i32 = arith.constant 0 : i32
    %c0_i32_0 = arith.constant 0 : i32
    %c0_i32_1 = arith.constant 0 : i32
    return %c0_i32, %c0_i32_0 : i32, i32
  }
  func.func @transform_3(%arg0: i32) -> (i32, i32) {
    %c0_i32 = arith.constant 0 : i32
    %c0_i32_0 = arith.constant 0 : i32
    %c0_i32_1 = arith.constant 0 : i32
    return %c0_i32, %c0_i32_0 : i32, i32
  }
  func.func @transform_4(%arg0: i32) -> (i32, i32) {
    %c0_i32 = arith.constant 0 : i32
    %c0_i32_0 = arith.constant 0 : i32
    %c0_i32_1 = arith.constant 0 : i32
    return %c0_i32, %c0_i32_0 : i32, i32
  }
  func.func @transform_5(%arg0: i32) -> (i32, i32, i32) {
    %c0_i32 = arith.constant 0 : i32
    %c0_i32_0 = arith.constant 0 : i32
    %c0_i32_1 = arith.constant 0 : i32
    return %arg0, %c0_i32, %c0_i32_0 : i32, i32, i32
  }
}

</mosaic_0001>

<bundles_post_ra>
// kernel: tpu_custom_call.1
= control target key start
LH: loop header
LB: loop body
LE: loop exit
PB: predicated region body
PF: predicated region fallthrough
CT: control target
= control target key end

     0   :  { %10 = vsyncpa [#allocation3], 0  ;;  %s1847_s0 = inlined_call_operand.hbm [shape: f32[2,16,256], index: 0, kind: input, shape index: {}]   ;;  %s1848_s1 = inlined_call_operand.vmem [shape: f32[16,8], index: 1, kind: input, shape index: {}]   ;;  %s1849_s2 = inlined_call_operand.vmem [shape: f32[1,8], index: 2, kind: input, shape index: {}]   ;;  %s1850_s3 = inlined_call_operand.vmem [shape: f32[8,16], index: 3, kind: input, shape index: {}]   ;;  %s1851_s4 = inlined_call_operand.vmem [shape: f32[1,16], index: 4, kind: input, shape index: {}]   ;;  %s1852_s5 = inlined_call_operand.hbm [shape: f32[2,16,256], index: 5, kind: output, shape index: {}]  }
   0x1   :  { %12 = vsyncpa [#allocation3 + $0x1], 0 }
   0x2   :  { %13 = vsyncpa [#allocation4], 0 }
   0x3   :  { %15 = vsyncpa [#allocation4 + $0x1], 0  ;;  %s1601_s18 = smov 0   ;;  %s1603_s19 = smov 0  }
   0x4   :  { %s1605_s20 = smov 0   ;;  %s1607_s21 = smov 0  }
   0x5 LB: > { %s1622_s22 = sadd.s32 4294967295, %s1561_s21   ;;  %s1299_s23 = sadd.s32 4294967294, %s1561_s21   ;;  %s1561_s21 = sphi %s1607_s21, %s1867_s21   ;;  %s1557_s20 = sphi %s1605_s20, %s1866_s20   ;;  %s1553_s19 = sphi %s1603_s19, %s1865_s19   ;;  %s1549_s18 = sphi %s1601_s18, %s1864_s18  }
   0x6   : > { %s1626_s24 = sadd.s32 1, %s1561_s21   ;;  %s28_s25 = sadd.s32 1, %s1557_s20 }
   0x7   : > { %s25_s26 = ssub.s32 %s1561_s21, %s1626_s24  ;;  %p35_p0 = scmp.ne.s32.totalorder %s1557_s20, %s1553_s19 }
   0x8   : > { %p26_p1 = scmp.eq.s32.totalorder %s25_s26, 0  ;;  %p36_p2 = scmp.eq.s32.totalorder %s1561_s21, 0 }
   0x9   : > { %p41_p3 = scmp.ne.s32.totalorder %s1553_s19, %s1549_s18  ;;  %p42_p4 = scmp.eq.s32.totalorder %s1622_s22, 0 }
   0xa   : > { %s1638_s27 = scalar_select %p26_p1, %s1557_s20, %s28_s25  }
   0xb   : > { %p1640_p5 = por %p36_p2, %p35_p0  ;;  %p1644_p6 = por %p42_p4, %p41_p3 }
   0xc   : > { %p149_p7 = scmp.eq.s32.totalorder %s1622_s22, 1  ;;  %p155_p8 = scmp.eq.s32.totalorder %s1299_s23, 1 }
   0xd   : > { %s1856_s29 = scalar_select %p1644_p6, 1, 0 }
   0xe   : > { %p1429_p10 = scmp.lt.s32.totalorder %s1561_s21, 2  ;;  %p1651_p11 = por %p149_p7, %p35_p0 }
   0xf   : > { %p1655_p12 = por %p155_p8, %p41_p3  ;;  %s187_s7 = sand.u32 1, %s1557_s20  }
  0x10   : > { %s1857_s30 = scalar_select %p1651_p11, 1, 0 }
  0x11   : > { %s1858_s6 = scalar_select %p1655_p12, 1, 0 }
  0x12   : > { %s1313_s8 = sshll.u32 %s1561_s21, 9  ;;  %s1302_s9 = sshll.u32 %s187_s7, 5 }
  0x13   : > { %s1664_s12 = scalar_lea.hbm %s1847_s0, %s1313_s8  ;;  %s191_s13 = scalar_lea.vmem [#allocation2], %s1302_s9 }
  0x14   : > { %s198_s14 = sshll.u32 %s191_s13, 4  ;;  %p1668_p13 = pnand %p1429_p10, %p1640_p5  ;;  %s1672_s14 = int_to_ptr.vmem [resolvable:$true] %s198_s14 }
  0x15   : > { %s1674_s16 = scalar_lea.sflag [#allocation3], %s187_s7  ;;  %s1469_s17 = scalar_lea.hbm %s1664_s12, 512 }
  0x16   : > { %p1470_p0 = scmp.ne.s32.totalorder %s1664_s12, %s1469_s17  ;;  %p1471_p1 = pneg %p1668_p13 }
  0x17   : > { %s1474_s26 = scalar_lea.hbm %s1847_s0, 1024  ;;  %p1475_p4 = scmp.lt.s32.totalorder %s1664_s12, %s1847_s0 }
  0x18   : > { %p1472_p2 = pnand %p1471_p1, %p1470_p0  ;;  %p1476_p5 = scmp.lt.s32.totalorder %s1474_s26, %s1469_s17 }
  0x1a   : > { %p1473_p3 = pneg %p1472_p2  ;;  %p1477_p7 = por %p1476_p5, %p1475_p4 }
  0x1c   : > { %p1478_p8 = pnand %p1477_p7, %p1473_p3 }
  0x1e   : > { %1481 = shalt.err (!%p1478_p8)
}
  0x1f   : > { %s1482_s7 = scalar_lea.vmem %s1672_s14, 512  ;;  %s1563_s9 = smov [#allocation2]  }
  0x20   : > { %p1483_p10 = scmp.ne.s32.totalorder %s1672_s14, %s1482_s7  ;;  %s1487_s10 = sshll.u32 %s1563_s9, 4  ;;  %s1488_s10 = int_to_ptr.vmem [resolvable:$false] %s1487_s10 }
  0x21   : > { %s1489_s11 = scalar_lea.vmem %s1488_s10, 1024  ;;  %p1490_p2 = scmp.lt.s32.totalorder %s1672_s14, %s1488_s10 }
  0x22   : > { %p1485_p9 = pnand %p1483_p10, %p1471_p1  ;;  %p1491_p12 = scmp.lt.s32.totalorder %s1489_s11, %s1482_s7 }
  0x24   : > { %p1486_p0 = pneg %p1485_p9  ;;  %p1492_p11 = por %p1491_p12, %p1490_p2 }
  0x26   : > { %p1493_p6 = pnand %p1492_p11, %p1486_p0 }
  0x28   : > { %1496 = shalt.err (!%p1493_p6)
}
  0x29   : > { %s1564_s13 = smov 256   ;;  %s1565_s17 = smov 16  }
  0x2a   : > { %1424 = dma.hbm_to_vmem [thread:$0]  (!%p1668_p13), %s1664_s12, 512, %s1672_s14, %s1674_s16, %s1564_s13, %s1564_s13, %s1565_s17  }
  0x2b   : > { %p1305_p9 = scmp.ge.s32.totalorder %s1561_s21, 1  ;;  %p206_p1 = scmp.lt.s32.totalorder %s1561_s21, 3 }
  0x2d   : > { %p207_p3 = pnand %p1305_p9, %p206_p1 }
  0x2e   : > { %s1698_s23 = sand.u32 (!%p207_p3), 1, %s1553_s19   ;;  %p1860_p6 = scmp.ne.s32.totalorder (!%p207_p3), %s1856_s29, 0 }
  0x2f   : > { %210 = sbr.rel (%p207_p3) target bundleno = 784 (0x310), region = 40  ;;  %s1306_s25 = sshll.u32 (!%p207_p3), %s1698_s23, 5 }
  0x30   : > { %s213_s26 = scalar_lea.sflag (!%p207_p3), [#allocation3], %s1698_s23  ;;  %s216_s28 = scalar_lea.vmem (!%p207_p3), [#allocation2], %s1306_s25 }
  0x34   : > { %1540 = dma.done.wait (%p1860_p6), %s213_s26, 512  }
  0x35   : > { %1542 = vsyncadd (%p1860_p6), %s213_s26, 4294966784  ;;  %v1708_v0 = vld [vmem:[%s216_s28] sm:$0xff]  ;;  %v1710_v1 = vld [vmem:[%s216_s28 + $0x8] sm:$0xff]  ;;  %v1566_v17 = vmov 0.0   ;;  %vm1567_vm0 = vmmov 0   ;;  %v260_v19 = vlaneseq  ;;  %vm271_vm1 = vcmask 130112  }
  0x36   : > { %v1712_v2 = vld [vmem:[%s216_s28 + $0x10] sm:$0xff]  ;;  %v247_v3 = vadd.f32 %v1710_v1, %v1708_v0  ;;  %v1716_v4 = vld [vmem:[%s216_s28 + $0x18] sm:$0xff]  ;;  %v256_v6 = vld [vmem:[%s1848_s1 + $0x8] sm:$0xff]  ;;  %1352 = vmatprep.subr.mxu1 %v1566_v17  ;;  %1345 = vmatprep.subr.mxu0 %v1566_v17  ;;  %vm273_vm2 = vcmask 130048   ;;  %vm739_vm3 = vcmask 64512   ;;  %s242_s13 = scalar_lea.vmem [#allocation5], %s1306_s25 }
  0x37   : > { %v250_v5 = vadd.f32 %v1716_v4, %v1712_v2  ;;  %v305_v7 = vand.u32 4294901760, %v256_v6  ;;  %v255_v8 = vld [vmem:[%s1848_s1] sm:$0xff]  ;;  %1356 = vmatprep.mubr.msk.f32.mxu1 %vm1567_vm0, %v1566_v17  ;;  %1349 = vmatprep.mubr.msk.f32.mxu0 %vm1567_vm0, %v1566_v17  ;;  %v261_v20 = vand.u32 127, %v260_v19  ;;  %v1744_v21 = vshrl.u32 %v260_v19, 7  ;;  %s1226_s17 = sshll.u32 %s242_s13, 4  ;;  %s1314_s26 = sshll.u32 %s1622_s22, 9  ;;  %s1797_s17 = int_to_ptr.vmem [resolvable:$true] %s1226_s17 }
  0x38   : > { %248 = vadd.xlane.f32.xlu0 %v247_v3  ;;  %v308_v10 = vand.u32 4294901760, %v255_v8  ;;  %v737_v38 = vld [vmem:[%s1850_s3] sm:$0xff]  ;;  %s1802_s25 = scalar_lea.hbm %s1852_s5, %s1314_s26  ;;  %s1213_s22 = scalar_lea.sflag [#allocation4], %s1698_s23 }
  0x39   : > { %v1726_v9 = vsub.f32 %v256_v6, %v305_v7  ;;  %1346 = vmatpush3.msra.mxu0 %v305_v7  ;;  %v266_v22 = vadd.s32 4294967288, %v261_v20  ;;  %v264_v24 = vsub.s32 %v261_v20, %v1744_v21  ;;  %v774_v39 = vand.u32 4294901760, %v737_v38  ;;  %v257_v48 = vld [vmem:[%s1849_s2] sm:$0x1]  ;;  %s1497_s14 = scalar_lea.vmem %s1797_s17, 512  ;;  %p1861_p12 = scmp.ne.s32.totalorder %s1857_s30, 0 }
  0x3a   : > { %v1729_v12 = vsub.f32 %v255_v8, %v308_v10  ;;  %1347 = vmatprep.subr.mxu0 %v1566_v17  ;;  %p1498_p11 = scmp.ne.s32.totalorder %s1797_s17, %s1497_s14  ;;  %s1568_s29 = smov [#allocation5]  }
  0x3b   : > { %v384_v11 = vand.u32 4294901760, %v1726_v9  ;;  %1348 = vmatpush3.msra.mxu0 %v308_v10  ;;  %v269_v26 = vsub.s32 %v266_v22, %v1744_v21  ;;  %v851_v40 = vsub.f32 %v737_v38, %v774_v39  ;;  %s1501_s15 = sshll.u32 %s1568_s29, 4  ;;  %s1502_s15 = int_to_ptr.vmem [resolvable:$false] %s1501_s15 }
  0x3c   : > { %251 = vadd.xlane.f32.xlu0 %v250_v5  ;;  %v391_v14 = vand.u32 4294901760, %v1729_v12  ;;  %1359 = vmatprep.subr.mxu0 %v1566_v17  ;;  %p1499_p13 = pnand %p1498_p11, %p1861_p12  ;;  %s1503_s16 = scalar_lea.vmem %s1502_s15, 1024 }
  0x3d   : > { %v385_v13 = vsub.f32 %v1726_v9, %v384_v11  ;;  %v852_v41 = vand.u32 4294901760, %v851_v40  ;;  %p1504_p5 = scmp.lt.s32.totalorder %s1797_s17, %s1502_s15  ;;  %p1505_p7 = scmp.lt.s32.totalorder %s1503_s16, %s1497_s14 }
  0x3e   : > { %v392_v16 = vsub.f32 %v1729_v12, %v391_v14  ;;  %p1500_p4 = pneg %p1499_p13 }
  0x3f   : > { %v386_v15 = vand.u32 4294901760, %v385_v13  ;;  %v853_v42 = vsub.f32 %v851_v40, %v852_v41  ;;  %p1506_p8 = por %p1505_p7, %p1504_p5 }
  0x40   : > { %v393_v18 = vand.u32 4294901760, %v392_v16 }
  0x41   : > { %1353 = vmatpush3.msra.mxu1 %v386_v15  ;;  %v854_v43 = vand.u32 4294901760, %v853_v42  ;;  %v738_v15 = vld [vmem:[%s1851_s4] sm:$0x1]  ;;  %p1507_p10 = pnand %p1506_p8, %p1500_p4 }
  0x42   : > { %1354 = vmatprep.subr.mxu1 %v1566_v17 }
  0x43   : > { %1355 = vmatpush3.msra.mxu1 %v393_v18 }
  0x44   : > { %1366 = vmatprep.subr.mxu1 %v1566_v17 }
  0xc1   : > { %v249_v23 = vpop.xlane.xlu0 %248 }
  0xc2   : > { %v253_v25 = vmul.f32 0.00390625, %v249_v23 }
  0xc4   : > { %v265_v29 = vrot.slane %v253_v25, %v264_v24 }
  0xc5   : > { %v252_v27 = vpop.xlane.xlu0 %251 }
  0xc6   : > { %v254_v28 = vmul.f32 0.00390625, %v252_v27 }
  0xc8   : > { %v270_v30 = vrot.slane %v254_v28, %v269_v26 }
  0xca   : > { %v272_v31 = vsel %vm271_vm1, %v270_v30, %v265_v29 }
  0xcb   : > { %v274_v32 = vsel %vm273_vm2, %v272_v31, 0 }
  0xcc   : > { %v343_v33 = vand.u32 4294901760, %v274_v32 }
  0xce   : > { %1357 = vmatmul.mubr.f32.vlgmr.msra.gmra.mxu1 %v343_v33  ;;  %v344_v34 = vsub.f32 %v274_v32, %v343_v33 }
  0xcf   : > { %1367 = vmatpush3.msra.mxu1 %v305_v7  ;;  %1370 = vmatprep.mubr.msk.f32.mxu1 %vm1567_vm0, %v1566_v17 }
  0xd0   : > { %1368 = vmatprep.subr.mxu1 %v1566_v17  ;;  %v345_v35 = vand.u32 4294901760, %v344_v34 }
  0xd1   : > { %1369 = vmatpush3.msra.mxu1 %v308_v10 }
  0xd2   : > { %1371 = vmatmul.mubr.f32.vlgmr.msra.gmra.mxu1 %v345_v35  ;;  %1380 = vmatprep.subr.mxu1 %v1566_v17  ;;  %v346_v36 = vsub.f32 %v344_v34, %v345_v35 }
  0xd3   : > { %1381 = vmatpush3.msra.mxu1 %v305_v7  ;;  %1384 = vmatprep.mubr.msk.f32.mxu1 %vm1567_vm0, %v1566_v17 }
  0xd4   : > { %1382 = vmatprep.subr.mxu1 %v1566_v17  ;;  %v347_v37 = vand.u32 4294901760, %v346_v36 }
  0xd5   : > { %1383 = vmatpush3.msra.mxu1 %v308_v10 }
  0xd6   : > { %1350 = vmatmul.mubr.f32.vlgmr.msra.gmra.mxu0 %v347_v37  ;;  %1385 = vmatmul.mubr.f32.vlgmr.msra.gmra.mxu1 %v343_v33 }
  0xd7   : > { %1360 = vmatpush3.msra.mxu0 %v1726_v9  ;;  %1363 = vmatprep.mubr.msk.f32.mxu0 %vm1567_vm0, %v1566_v17 }
  0xd8   : > { %1361 = vmatprep.subr.mxu0 %v1566_v17  ;;  %1392 = vmatprep.subr.mxu1 %v1566_v17 }
  0xd9   : > { %1362 = vmatpush3.msra.mxu0 %v1729_v12  ;;  %1394 = vmatprep.mubr.msk.f32.mxu1 %vm1567_vm0, %v1566_v17 }
  0xda   : > { %1373 = vmatprep.subr.mxu0 %v1566_v17  ;;  %1364 = vmatmul.mubr.f32.vlgmr.msra.gmra.mxu0 %v344_v34  ;;  %v1195_v34 = vsub.s32 0, %v1744_v21 }
  0xdb   : > { %1374 = vmatpush3.msra.mxu0 %v384_v11  ;;  %1377 = vmatprep.mubr.msk.f32.mxu0 %vm1567_vm0, %v1566_v17 }
  0xdc   : > { %1375 = vmatprep.subr.mxu0 %v1566_v17  ;;  %1393 = vmatpush3.msra.mxu1 %v854_v43 }
  0xdd   : > { %1376 = vmatpush3.msra.mxu0 %v391_v14  ;;  %1402 = vmatprep.subr.mxu1 %v1566_v17 }
  0xde   : > { %1378 = vmatmul.mubr.f32.vlgmr.msra.gmra.mxu0 %v343_v33  ;;  %1387 = vmatprep.subr.mxu0 %v1566_v17 }
  0xdf   : > { %1389 = vmatprep.mubr.msk.f32.mxu0 %vm1567_vm0, %v1566_v17  ;;  %1388 = vmatpush3.msra.mxu0 %v774_v39 }
  0xe0   : > { %1397 = vmatprep.subr.mxu0 %v1566_v17 }
 0x18e   : > { %v430_v44 = vpop.f32.mrf.mxu1 }
 0x190   : > { %v1358_v45 = vpop.f32.mrf.mxu1 }
 0x192   : > { %v581_v46 = vpop.f32.mrf.mxu1 }
 0x194   : > { %v1372_v47 = vpop.f32.mrf.mxu1 }
 0x196   : > { %v349_v49 = vpop.f32.mrf.mxu0  ;;  %v731_v50 = vpop.f32.mrf.mxu1 }
 0x197   : > { %v350_v51 = vadd.f32 %v349_v49, %v257_v48 }
 0x198   : > { %v1351_v52 = vpop.f32.mrf.mxu0  ;;  %v1386_v53 = vpop.f32.mrf.mxu1 }
 0x199   : > { %v431_v54 = vadd.f32 %v430_v44, %v350_v51 }
 0x19a   : > { %v506_v55 = vpop.f32.mrf.mxu0 }
 0x19b   : > { %v507_v56 = vadd.f32 %v506_v55, %v431_v54 }
 0x19c   : > { %v1365_v57 = vpop.f32.mrf.mxu0 }
 0x19d   : > { %v582_v58 = vadd.f32 %v581_v46, %v507_v56 }
 0x19e   : > { %v658_v59 = vpop.f32.mrf.mxu0 }
 0x19f   : > { %v659_v60 = vadd.f32 %v658_v59, %v582_v58 }
 0x1a0   : > { %v1379_v61 = vpop.f32.mrf.mxu0 }
 0x1a1   : > { %v732_v62 = vadd.f32 %v731_v50, %v659_v60 }
 0x1a3   : > { %v735_v63 = vmax.f32 %v732_v62, 0.0 }
 0x1a5   : > { %v736_v3 = vmin.f32 %v735_v63, 6.0 }
 0x1a7   : > { %v741_v5 = vsel %vm739_vm3, %v736_v3, 0 }
 0x1a8   : > { %v809_v6 = vand.u32 4294901760, %v741_v5 }
 0x1aa   : > { %v810_v7 = vsub.f32 %v741_v5, %v809_v6  ;;  %1395 = vmatmul.mubr.f32.vlgmr.msra.gmra.mxu1 %v809_v6 }
 0x1ab   : > { %1403 = vmatpush3.msra.mxu1 %v774_v39  ;;  %1404 = vmatprep.mubr.msk.f32.mxu1 %vm1567_vm0, %v1566_v17 }
 0x1ac   : > { %v811_v8 = vand.u32 4294901760, %v810_v7  ;;  %1412 = vmatprep.subr.mxu1 %v1566_v17 }
 0x1ae   : > { %1405 = vmatmul.mubr.f32.vlgmr.msra.gmra.mxu1 %v811_v8  ;;  %v812_v9 = vsub.f32 %v810_v7, %v811_v8 }
 0x1af   : > { %1413 = vmatpush3.msra.mxu1 %v774_v39  ;;  %1414 = vmatprep.mubr.msk.f32.mxu1 %vm1567_vm0, %v1566_v17 }
 0x1b0   : > { %v813_v10 = vand.u32 4294901760, %v812_v9 }
 0x1b2   : > { %1390 = vmatmul.mubr.f32.vlgmr.msra.gmra.mxu0 %v813_v10  ;;  %1415 = vmatmul.mubr.f32.vlgmr.msra.gmra.mxu1 %v809_v6 }
 0x1b3   : > { %1398 = vmatpush3.msra.mxu0 %v851_v40  ;;  %1399 = vmatprep.mubr.msk.f32.mxu0 %vm1567_vm0, %v1566_v17 }
 0x1b4   : > { %1407 = vmatprep.subr.mxu0 %v1566_v17 }
 0x1b6   : > { %1400 = vmatmul.mubr.f32.vlgmr.msra.gmra.mxu0 %v810_v7 }
 0x1b7   : > { %1408 = vmatpush3.msra.mxu0 %v852_v41  ;;  %1409 = vmatprep.mubr.msk.f32.mxu0 %vm1567_vm0, %v1566_v17 }
 0x1ba   : > { %1410 = vmatmul.mubr.f32.vlgmr.msra.gmra.mxu0 %v809_v6 }
 0x26a   : > { %v891_v11 = vpop.f32.mrf.mxu1 }
 0x26c   : > { %v1396_v12 = vpop.f32.mrf.mxu1 }
 0x26e   : > { %v1039_v13 = vpop.f32.mrf.mxu1 }
 0x270   : > { %v1406_v14 = vpop.f32.mrf.mxu1 }
 0x272   : > { %v815_v16 = vpop.f32.mrf.mxu0  ;;  %v1185_v18 = vpop.f32.mrf.mxu1 }
 0x273   : > { %v816_v19 = vadd.f32 %v815_v16, %v738_v15 }
 0x274   : > { %v1391_v20 = vpop.f32.mrf.mxu0  ;;  %v1416_v22 = vpop.f32.mrf.mxu1 }
 0x275   : > { %v892_v23 = vadd.f32 %v891_v11, %v816_v19 }
 0x276   : > { %v965_v24 = vpop.f32.mrf.mxu0 }
 0x277   : > { %v966_v25 = vadd.f32 %v965_v24, %v892_v23 }
 0x278   : > { %v1401_v26 = vpop.f32.mrf.mxu0 }
 0x279   : > { %v1040_v17 = vadd.f32 %v1039_v13, %v966_v25 }
 0x27a   : > { %v1113_v27 = vpop.f32.mrf.mxu0 }
 0x27b   : > { %v1114_v28 = vadd.f32 %v1113_v27, %v1040_v17 }
 0x27c   : > { %v1411_v29 = vpop.f32.mrf.mxu0 }
 0x27d   : > { %v1186_v30 = vadd.f32 %v1185_v18, %v1114_v28 }
 0x27f   : > { %v1189_v31 = vadd.f32 3.0, %v1186_v30 }
 0x281   : > { %v1190_v32 = vmax.f32 %v1189_v31, 0.0 }
 0x283   : > { %v1191_v33 = vmin.f32 %v1190_v32, 6.0 }
 0x285   : > { %v1192_v35 = vmul.f32 0.16666667, %v1191_v33 }
 0x287   : > { %v1196_v36 = vrot.slane %v1192_v35, %v1195_v34 }
 0x289   : > { %1198 = vbcast.lane.b32.xlu1 %v1196_v36, 256 }
 0x28d   : > { %1202 = vbcast.lane.b32.xlu1 %v1196_v36, 264 }
 0x2fb   : > { %v1199_v37 = vpop.permute.xlu1 %1198 }
 0x2fc   : > { %v1204_v38 = vmul.f32 %v1199_v37, %v1708_v0  ;;  %v1205_v39 = vmul.f32 %v1199_v37, %v1710_v1 }
 0x2fe   : > { %1208 = vst [vmem:[%s242_s13] sm:$0xff] %v1204_v38  ;;  %1209 = vst [vmem:[%s242_s13 + $0x8] sm:$0xff] %v1205_v39 }
 0x2ff   : > { %v1203_v21 = vpop.permute.xlu1 %1202 }
 0x300   : > { %v1206_v40 = vmul.f32 %v1203_v21, %v1712_v2  ;;  %v1207_v0 = vmul.f32 %v1203_v21, %v1716_v4 }
 0x302   : > { %1210 = vst [vmem:[%s242_s13 + $0x10] sm:$0xff] %v1206_v40  ;;  %1211 = vst [vmem:[%s242_s13 + $0x18] sm:$0xff] %v1207_v0 }
 0x303   : > { %1510 = shalt.err (!%p1507_p10)
}
 0x304   : > { %s1511_s8 = scalar_lea.hbm %s1802_s25, 512  ;;  %s1515_s10 = scalar_lea.hbm %s1852_s5, 1024 }
 0x305   : > { %p1512_p0 = scmp.ne.s32.totalorder %s1802_s25, %s1511_s8  ;;  %p1516_p1 = scmp.lt.s32.totalorder %s1802_s25, %s1852_s5 }
 0x306   : > { %p1517_p3 = scmp.lt.s32.totalorder %s1515_s10, %s1511_s8 }
 0x307   : > { %p1513_p2 = pnand %p1512_p0, %p1861_p12 }
 0x308   : > { %p1518_p6 = por %p1517_p3, %p1516_p1 }
 0x309   : > { %p1514_p9 = pneg %p1513_p2 }
 0x30b   : > { %p1519_p11 = pnand %p1518_p6, %p1514_p9 }
 0x30d   : > { %1522 = shalt.err (!%p1519_p11)
}
 0x30e   : > { %s1569_s26 = smov 256   ;;  %s1570_s28 = smov 16  }
 0x30f   : > { %1419 = dma.vmem_to_hbm [thread:$0]  (%p1861_p12), %s1797_s17, 512, %s1802_s25, %s1213_s22, %s1569_s26, %s1569_s26, %s1570_s28  }
 0x310 PF: > { %s1241_s12 = sand.u32 1, %s1549_s18   ;;  %p1862_p13 = scmp.ne.s32.totalorder %s1858_s6, 0 }
 0x311   : > { %p1863_p4 = scmp.ge.s32.totalorder %s1561_s21, 2  ;;  %s1242_s14 = scalar_lea.sflag [#allocation4], %s1241_s12 }
 0x313   : > { %p1426_p5 = pnand %p1863_p4, %p1862_p13 }
 0x315   : > { %p1427_p7 = pneg %p1426_p5 }
 0x317   : > { %1544 = dma.done.wait (%p1427_p7), %s1242_s14, 512  }
 0x318   : > { %1546 = vsyncadd (%p1427_p7), %s1242_s14, 4294966784  ;;  %p18_p8 = scmp.ge.s32.totalorder %s1626_s24, 4   ;;  %s1864_s18 = smov %s1553_s19 }
 0x319   : > { %s1865_s19 = smov %s1557_s20  ;;  %s1866_s20 = smov %s1638_s27 }
 0x31a   : > { %s1867_s21 = smov %s1626_s24  ;;  %20 = sbr.rel (!%p18_p8) target bundleno = 5 (0x5), region = 85 }
 0x31f   :  { %1247 = vsyncpa [#allocation3], 1 }
 0x320   :  { %1249 = vsyncpa [#allocation3 + $0x1], 1 }
 0x321   :  { %1250 = vsyncpa [#allocation4], 1 }
 0x322   :  { %1252 = vsyncpa [#allocation4 + $0x1], 1 }

</bundles_post_ra>
